<compile_context>
chip_gen: v7x
topology: tpu7x:2x2x1
jax: 0.10.0
libtpu: 0.0.40
codegen_flags: <defaults>
</compile_context>

<pallas_src>
import numpy as np
import jax
import jax.numpy as jnp
from jax.experimental import pallas as pl
from jax.experimental.pallas import tpu as pltpu


# ---------------------------------------------------------------------------
# Pallas kernel: per-sequence-tile embedding lookup + PE add
# ---------------------------------------------------------------------------
def embed_kernel(ids_ref, emb_ref, pe_ref, out_ref):
    # ids_ref: (TS, N)   int32 token ids for this sequence tile
    # emb_ref: (V, D)    full embedding table, VMEM resident (tiny vocab)
    # pe_ref:  (TS, D)   positional-encoding rows for this tile (one per seq pos)
    # out_ref: (TS, N*D) lane-dense output tile; column strip j*D:(j+1)*D holds
    #                    embedding(x[:, j]) + PE  (row-major match of (TS,N,D))
    ids = ids_ref[...]                       # (TS, N)
    emb = emb_ref[...]                       # (V, D)
    pe = pe_ref[...]                         # (TS, D)

    ts = ids.shape[0]
    n = ids.shape[1]
    vocab = emb.shape[0]
    d = emb.shape[1]

    # one-hot column index grid, hoisted out of the batch loop
    col = jax.lax.broadcasted_iota(jnp.int32, (ts, vocab), dimension=1)

    # Static unroll over the (small) batch dimension N.  Each iteration is a
    # clean 2-D (TS, V) @ (V, D) MXU matmul; the PE add reuses the same (TS, D)
    # block for every batch column (VPU broadcast over N -- no HBM broadcast).
    for j in range(n):
        ids_j = ids[:, j:j + 1]                                   # (TS, 1)
        onehot = (col == ids_j).astype(jnp.float32)               # (TS, V)
        g = jnp.dot(onehot, emb, preferred_element_type=jnp.float32)  # (TS, D)
        out_ref[:, j * d:(j + 1) * d] = (g + pe).astype(out_ref.dtype)
    # TODO(synk): dropout is identity (eval mode); training-mode random
    # masking/scaling is omitted.


# ---------------------------------------------------------------------------
# Parameter / buffer construction (deterministic, matches PyTorch __init__)
# ---------------------------------------------------------------------------
def make_positional_encoding(max_sequence_size: int, model_size: int) -> jnp.ndarray:
    # Mirrors Embedding._register_positional_encoding (float64 math, f32 store).
    pe = np.zeros((max_sequence_size, model_size), dtype=np.float32)
    position = (np.arange(0, max_sequence_size, dtype=np.float64).reshape(-1, 1)
                * np.ones((max_sequence_size, model_size // 2), dtype=np.float64))
    harmonic = 10000.0 ** (np.arange(0, model_size, 2, dtype=np.float64) / model_size)
    pe[:, ::2] = np.sin(position / harmonic)
    pe[:, 1::2] = np.cos(position / harmonic)
    return jnp.asarray(pe[:, None, :])            # (max_seq, 1, D)  (PyTorch layout)


def make_embedding_table(key, vocabulary_size: int, model_size: int) -> jnp.ndarray:
    # nn.Embedding default init: N(0, 1)
    return jax.random.normal(key, (vocabulary_size, model_size), dtype=jnp.float32)


# ---------------------------------------------------------------------------
# Wrapper: glue (slice / layout) + pallas_call
# ---------------------------------------------------------------------------
def embedding_forward(x, emb_table, pos_enc, max_sequence_size, *, tile_s=256):
    # x: (S, N) int; emb_table: (V, D); pos_enc: (max_seq, 1, D)
    S = min(x.shape[0], max_sequence_size)
    x = x[:S]
    N = x.shape[1]
    V, D = emb_table.shape

    ids = x.astype(jnp.int32)                              # (S, N)
    pe = pos_enc.reshape(pos_enc.shape[0], D)[:S]          # (S, D) -- no N broadcast

    # Tile the sequence axis.  tile_s rows == tile_s * N tokens per grid step.
    tile_s = min(tile_s, S)
    if tile_s < S:
        tile_s = max(8, (tile_s // 8) * 8)                 # keep (8,128) rule happy
    grid = (pl.cdiv(S, tile_s),)

    # Explicit VMEM budget: double-buffered tiles + double-buffered table,
    # capped at 48 MiB so it also fits v7x's 64 MiB / TC VMEM with headroom.
    tile_bytes = 4 * (tile_s * N + tile_s * D + tile_s * N * D)
    table_bytes = 4 * V * D
    vmem_limit = int(min(max(4 * tile_bytes + 2 * table_bytes, 32 * 1024 * 1024),
                         48 * 1024 * 1024))

    out2d = pl.pallas_call(
        embed_kernel,
        out_shape=jax.ShapeDtypeStruct((S, N * D), jnp.float32),   # lane-dense
        grid_spec=pltpu.PrefetchScalarGridSpec(
            num_scalar_prefetch=0,
            grid=grid,
            in_specs=[
                pl.BlockSpec((tile_s, N), lambda i: (i, 0)),       # token ids tile
                pl.BlockSpec((V, D), lambda i: (0, 0)),            # full emb table
                pl.BlockSpec((tile_s, D), lambda i: (i, 0)),       # PE rows (per seq pos)
            ],
            out_specs=pl.BlockSpec((tile_s, N * D), lambda i: (i, 0)),
        ),
        compiler_params=pltpu.CompilerParams(
            dimension_semantics=("parallel",),                     # megacore on v7x
            vmem_limit_bytes=vmem_limit,
        ),
    )(ids, emb_table, pe)

    # (S, N*D) -> (S, N, D): pure metadata reshape (row-major match).
    return out2d.reshape(S, N, D)


if __name__ == "__main__":
    # Small shapes consistent with the module's forward: x is (S, N) indices.
    VOCAB = 64
    MODEL = 32          # D
    MAX_SEQ = 1000
    S, N = 8, 4
    DROPOUT = 0.1       # identity at inference

    key = jax.random.PRNGKey(0)
    k_emb, k_x = jax.random.split(key)

    emb_table = make_embedding_table(k_emb, VOCAB, MODEL)        # (V, D)
    pos_enc = make_positional_encoding(MAX_SEQ, MODEL)           # (max_seq, 1, D)
    x = jax.random.randint(k_x, (S, N), 0, VOCAB, dtype=jnp.int32)

    out = embedding_forward(x, emb_table, pos_enc, MAX_SEQ)
    out = jax.block_until_ready(out)

    # Pure-JAX reference check
    ref = jnp.take(emb_table, x, axis=0) + pos_enc[:S]
    assert out.shape == (S, N, MODEL)
    assert jnp.allclose(out, ref, atol=1e-5, rtol=1e-5)

    print("KERNEL_OK")
</pallas_src>

<mosaic_0001>
module attributes {stable_mosaic.version = 11 : i64} {
  func.func @embed_kernel(%arg0: i32, %arg1: memref<8x4xi32, #tpu.memory_space<vmem>>, %arg2: memref<64x32xf32, #tpu.memory_space<vmem>>, %arg3: memref<8x32xf32, #tpu.memory_space<vmem>>, %arg4: memref<8x128xf32, #tpu.memory_space<vmem>>) attributes {dimension_semantics = [#tpu.dimension_semantics<parallel>], iteration_bounds = array<i64: 1>, scalar_prefetch = 0 : i64, scratch_operands = 0 : i64, tpu.core_type = #tpu.core_type<tc>, window_params = [{transform_indices = @transform_0, window_bounds = array<i64: 8, 4>}, {pipeline_mode = #tpu.pipeline_mode<synchronous>, transform_indices = @transform_1, window_bounds = array<i64: 64, 32>}, {transform_indices = @transform_2, window_bounds = array<i64: 8, 32>}, {transform_indices = @transform_3, window_bounds = array<i64: 8, 128>}]} {
    %c0 = arith.constant 0 : index
    %c0_0 = arith.constant 0 : index
    %0 = vector.load %arg1[%c0, %c0_0] : memref<8x4xi32, #tpu.memory_space<vmem>>, vector<8x4xi32>
    %c0_1 = arith.constant 0 : index
    %c0_2 = arith.constant 0 : index
    %1 = vector.load %arg2[%c0_1, %c0_2] : memref<64x32xf32, #tpu.memory_space<vmem>>, vector<64x32xf32>
    %c0_3 = arith.constant 0 : index
    %c0_4 = arith.constant 0 : index
    %2 = vector.load %arg3[%c0_3, %c0_4] : memref<8x32xf32, #tpu.memory_space<vmem>>, vector<8x32xf32>
    %3 = tpu.iota {dimensions = array<i32: 1>} : vector<8x64xi32>
    %4 = vector.extract_strided_slice %0 {offsets = [0, 0], sizes = [8, 1], strides = [1, 1]} : vector<8x4xi32> to vector<8x1xi32>
    %5 = vector.broadcast %4 : vector<8x1xi32> to vector<8x64xi32>
    %6 = arith.cmpi eq, %3, %5 : vector<8x64xi32>
    %7 = arith.extui %6 : vector<8x64xi1> to vector<8x64xi32>
    %8 = arith.sitofp %7 : vector<8x64xi32> to vector<8x64xf32>
    %cst = arith.constant dense<0.000000e+00> : vector<8x32xf32>
    %9 = tpu.matmul %8, %1, %cst {dimension_numbers = #tpu.dot_dimension_numbers<[1], [0], [0], [1], [0, 0, 1, 1], [], []>} : vector<8x64xf32>, vector<64x32xf32>, vector<8x32xf32> -> vector<8x32xf32>
    %10 = arith.addf %9, %2 : vector<8x32xf32>
    %c0_5 = arith.constant 0 : index
    %c0_6 = arith.constant 0 : index
    %11 = vector.load %arg4[%c0_5, %c0_6] : memref<8x128xf32, #tpu.memory_space<vmem>>, vector<8x32xf32>
    tpu.vector_store %arg4[%c0_5, %c0_6], %10 {strides = array<i32>} : memref<8x128xf32, #tpu.memory_space<vmem>>, vector<8x32xf32>,
    %12 = vector.extract_strided_slice %0 {offsets = [0, 1], sizes = [8, 1], strides = [1, 1]} : vector<8x4xi32> to vector<8x1xi32>
    %13 = vector.broadcast %12 : vector<8x1xi32> to vector<8x64xi32>
    %14 = arith.cmpi eq, %3, %13 : vector<8x64xi32>
    %15 = arith.extui %14 : vector<8x64xi1> to vector<8x64xi32>
    %16 = arith.sitofp %15 : vector<8x64xi32> to vector<8x64xf32>
    %cst_7 = arith.constant dense<0.000000e+00> : vector<8x32xf32>
    %17 = tpu.matmul %16, %1, %cst_7 {dimension_numbers = #tpu.dot_dimension_numbers<[1], [0], [0], [1], [0, 0, 1, 1], [], []>} : vector<8x64xf32>, vector<64x32xf32>, vector<8x32xf32> -> vector<8x32xf32>
    %18 = arith.addf %17, %2 : vector<8x32xf32>
    %c0_8 = arith.constant 0 : index
    %c32 = arith.constant 32 : index
    %19 = vector.load %arg4[%c0_8, %c32] : memref<8x128xf32, #tpu.memory_space<vmem>>, vector<8x32xf32>
    tpu.vector_store %arg4[%c0_8, %c32], %18 {strides = array<i32>} : memref<8x128xf32, #tpu.memory_space<vmem>>, vector<8x32xf32>,
    %20 = vector.extract_strided_slice %0 {offsets = [0, 2], sizes = [8, 1], strides = [1, 1]} : vector<8x4xi32> to vector<8x1xi32>
    %21 = vector.broadcast %20 : vector<8x1xi32> to vector<8x64xi32>
    %22 = arith.cmpi eq, %3, %21 : vector<8x64xi32>
    %23 = arith.extui %22 : vector<8x64xi1> to vector<8x64xi32>
    %24 = arith.sitofp %23 : vector<8x64xi32> to vector<8x64xf32>
    %cst_9 = arith.constant dense<0.000000e+00> : vector<8x32xf32>
    %25 = tpu.matmul %24, %1, %cst_9 {dimension_numbers = #tpu.dot_dimension_numbers<[1], [0], [0], [1], [0, 0, 1, 1], [], []>} : vector<8x64xf32>, vector<64x32xf32>, vector<8x32xf32> -> vector<8x32xf32>
    %26 = arith.addf %25, %2 : vector<8x32xf32>
    %c0_10 = arith.constant 0 : index
    %c64 = arith.constant 64 : index
    %27 = vector.load %arg4[%c0_10, %c64] : memref<8x128xf32, #tpu.memory_space<vmem>>, vector<8x32xf32>
    tpu.vector_store %arg4[%c0_10, %c64], %26 {strides = array<i32>} : memref<8x128xf32, #tpu.memory_space<vmem>>, vector<8x32xf32>,
    %28 = vector.extract_strided_slice %0 {offsets = [0, 3], sizes = [8, 1], strides = [1, 1]} : vector<8x4xi32> to vector<8x1xi32>
    %29 = vector.broadcast %28 : vector<8x1xi32> to vector<8x64xi32>
    %30 = arith.cmpi eq, %3, %29 : vector<8x64xi32>
    %31 = arith.extui %30 : vector<8x64xi1> to vector<8x64xi32>
    %32 = arith.sitofp %31 : vector<8x64xi32> to vector<8x64xf32>
    %cst_11 = arith.constant dense<0.000000e+00> : vector<8x32xf32>
    %33 = tpu.matmul %32, %1, %cst_11 {dimension_numbers = #tpu.dot_dimension_numbers<[1], [0], [0], [1], [0, 0, 1, 1], [], []>} : vector<8x64xf32>, vector<64x32xf32>, vector<8x32xf32> -> vector<8x32xf32>
    %34 = arith.addf %33, %2 : vector<8x32xf32>
    %c0_12 = arith.constant 0 : index
    %c96 = arith.constant 96 : index
    %35 = vector.load %arg4[%c0_12, %c96] : memref<8x128xf32, #tpu.memory_space<vmem>>, vector<8x32xf32>
    tpu.vector_store %arg4[%c0_12, %c96], %34 {strides = array<i32>} : memref<8x128xf32, #tpu.memory_space<vmem>>, vector<8x32xf32>,
    return
  }
  func.func @transform_0(%arg0: i32) -> (i32, i32) {
    %c0_i32 = arith.constant 0 : i32
    %c0_i32_0 = arith.constant 0 : i32
    return %arg0, %c0_i32 : i32, i32
  }
  func.func @transform_1(%arg0: i32) -> (i32, i32) {
    %c0_i32 = arith.constant 0 : i32
    %c0_i32_0 = arith.constant 0 : i32
    %c0_i32_1 = arith.constant 0 : i32
    return %c0_i32, %c0_i32_0 : i32, i32
  }
  func.func @transform_2(%arg0: i32) -> (i32, i32) {
    %c0_i32 = arith.constant 0 : i32
    %c0_i32_0 = arith.constant 0 : i32
    return %arg0, %c0_i32 : i32, i32
  }
  func.func @transform_3(%arg0: i32) -> (i32, i32) {
    %c0_i32 = arith.constant 0 : i32
    %c0_i32_0 = arith.constant 0 : i32
    return %arg0, %c0_i32 : i32, i32
  }
}

</mosaic_0001>

<bundles_post_ra>
// kernel: tpu_custom_call.1
= control target key start
LH: loop header
LB: loop body
LE: loop exit
PB: predicated region body
PF: predicated region fallthrough
CT: control target
= control target key end

     0   :  { %v586_v2 = vmov 0   ;;  %v587_v3 = vmov 2   ;;  %v588_v8 = vmov 0.0|0.0   ;;  %s683_s0 = inlined_call_operand.vmem [shape: s32[8,4], index: 0, kind: input, shape index: {}]   ;;  %s684_s1 = inlined_call_operand.vmem [shape: f32[64,32], index: 1, kind: input, shape index: {}]   ;;  %s685_s2 = inlined_call_operand.vmem [shape: f32[8,32], index: 2, kind: input, shape index: {}]   ;;  %s686_s3 = inlined_call_operand.hbm [shape: f32[8,128], index: 3, kind: output, shape index: {}]  }
   0x1   :  { %v15_v0 = vld [vmem:[%s683_s0] sm:$0xff]  ;;  %557 = vset.pattern.permute.xlu0 %v586_v2  ;;  %559 = vset.pattern.permute.xlu1 %v587_v3  ;;  %v17_v4 = vld [vmem:[%s684_s1 + $0x8] sm:$0xff]  ;;  %v18_v5 = vld [vmem:[%s684_s1 + $0x10] sm:$0xff] }
   0x2   :  { %v16_v1 = vld [vmem:[%s684_s1] sm:$0xff]  ;;  %v19_v6 = vld [vmem:[%s684_s1 + $0x18] sm:$0xff]  ;;  %28 = vperm.xlu0 %557, %v15_v0   ;;  %195 = vperm.xlu1 %559, %v15_v0  }
   0x3   :  { %v499_v7 = vpack.c.bf16 %v17_v4, %v16_v1  ;;  %498 = vmatprep.subr.bf16.mxu0 %v588_v8  ;;  %510 = vmatprep.subr.bf16.mxu1 %v588_v8 }
   0x4   :  { %8 = vsyncpa [#allocation3], 0  ;;  %v502_v9 = vpack.c.bf16 %v19_v6, %v18_v5  ;;  %v20_v10 = vld [vmem:[%s684_s1 + $0x20] sm:$0xff]  ;;  %v21_v11 = vld [vmem:[%s684_s1 + $0x28] sm:$0xff]  ;;  %v589_v12 = vmov 1   ;;  %v590_v13 = vmov 3   ;;  %v25_v19 = vlaneseq }
   0x5   :  { %500 = vmatpush3.bf16.msra.mxu0 %v499_v7  ;;  %512 = vmatpush3.bf16.msra.mxu1 %v499_v7  ;;  %v505_v14 = vpack.c.bf16 %v21_v11, %v20_v10  ;;  %v22_v15 = vld [vmem:[%s684_s1 + $0x30] sm:$0xff]  ;;  %v23_v16 = vld [vmem:[%s684_s1 + $0x38] sm:$0xff]  ;;  %vm591_vm0 = vmmov 0   ;;  %v592_v17 = vmov 0.0   ;;  %vm33_vm1 = vcmask 523264   ;;  %v24_v29 = vld [vmem:[%s685_s2] sm:$0xff] }
   0x6   :  { %501 = vmatprep.subr.bf16.mxu0 %v588_v8  ;;  %513 = vmatprep.subr.bf16.mxu1 %v588_v8  ;;  %v508_v18 = vpack.c.bf16 %v23_v16, %v22_v15  ;;  %v26_v20 = vand.u32 127, %v25_v19  ;;  %vm107_vm6 = vcmask 261120   ;;  %s593_s30 = smov 32   ;;  %s594_s4 = smov 64   ;;  %vm192_vm7 = vcmask 523520  }
   0x7   :  { %558 = vset.pattern.permute.xlu0 %v589_v12  ;;  %560 = vset.pattern.permute.xlu1 %v590_v13  ;;  %s595_s5 = smov 96   ;;  %vm277_vm8 = vcmask 785920   ;;  %s596_s2 = smov [#allocation2]   ;;  %vm362_vm9 = vcmask 1048320  }
   0x8   :  { %110 = vperm.xlu0 %558, %v15_v0   ;;  %280 = vperm.xlu1 %560, %v15_v0   ;;  %s370_s6 = sshll.u32 %s596_s2, 4  ;;  %s371_s6 = int_to_ptr.vmem [resolvable:$true] %s370_s6 }
   0x9   :  { %503 = vmatpush3.bf16.msra.mxu0 %v502_v9  ;;  %515 = vmatpush3.bf16.msra.mxu1 %v502_v9  ;;  %s562_s7 = scalar_lea.vmem %s371_s6, 128  ;;  %p567_p1 = scmp.lt.s32.totalorder %s371_s6, %s371_s6 }
   0xa   :  { %504 = vmatprep.subr.bf16.mxu0 %v588_v8  ;;  %516 = vmatprep.subr.bf16.mxu1 %v588_v8  ;;  %p563_p0 = scmp.ne.s32.totalorder %s371_s6, %s562_s7  ;;  %p568_p2 = scmp.lt.s32.totalorder %s562_s7, %s562_s7 }
   0xb   :  { %438 = vmatprep.mubr.msk.f32.mxu0 %vm591_vm0, %v592_v17  ;;  %457 = vmatprep.mubr.msk.f32.mxu1 %vm591_vm0, %v592_v17 }
   0xc   :  { %561 = vset.pattern.permute.xlu0 %v590_v13  ;;  %p569_p3 = por %p568_p2, %p567_p1 }
   0xd   :  { %506 = vmatpush3.bf16.msra.mxu0 %v505_v14  ;;  %518 = vmatpush3.bf16.msra.mxu1 %v505_v14 }
   0xe   :  { %507 = vmatprep.subr.bf16.mxu0 %v588_v8  ;;  %519 = vmatprep.subr.bf16.mxu1 %v588_v8  ;;  %p570_p4 = pnand %p569_p3, %p563_p0 }
  0x11   :  { %509 = vmatpush3.bf16.msra.mxu0 %v508_v18  ;;  %521 = vmatpush3.bf16.msra.mxu1 %v508_v18 }
  0x12   :  { %522 = vmatprep.subr.bf16.mxu0 %v588_v8  ;;  %534 = vmatprep.subr.bf16.mxu1 %v588_v8 }
  0x81   :  { %v29_v21 = vpop.permute.xlu0 %28  ;;  %v196_v25 = vpop.permute.xlu1 %195 }
  0x82   :  { %vm30_vm2 = vcmp.eq.s32.totalorder %v26_v20, %v29_v21  ;;  %vm197_vm4 = vcmp.eq.s32.totalorder %v26_v20, %v196_v25 }
  0x83   :  { %v378_v22 = vsel %vm30_vm2, 1.0, %v592_v17  ;;  %v382_v27 = vsel %vm197_vm4, 1.0, %v592_v17 }
  0x84   :  { %439 = vmatmul.mubr.msk.f32.vlgmr.msra.gmra.mrb[0].mxu0 %vm33_vm1, %v378_v22 }
  0x85   :  { %524 = vmatpush3.bf16.msra.mxu0 %v499_v7  ;;  %476 = vmatprep.mubr.msk.f32.mxu0 %vm591_vm0, %v592_v17 }
  0x86   :  { %525 = vmatprep.subr.bf16.mxu0 %v588_v8 }
  0x87   :  { %v111_v23 = vpop.permute.xlu0 %110  ;;  %v281_v26 = vpop.permute.xlu1 %280 }
  0x88   :  { %vm112_vm3 = vcmp.eq.s32.totalorder %v26_v20, %v111_v23  ;;  %vm282_vm5 = vcmp.eq.s32.totalorder %v26_v20, %v281_v26 }
  0x89   :  { %v380_v24 = vsel %vm112_vm3, 1.0, %v592_v17  ;;  %527 = vmatpush3.bf16.msra.mxu0 %v502_v9  ;;  %v384_v28 = vsel %vm282_vm5, 1.0, %v592_v17 }
  0x8a   :  { %458 = vmatmul.mubr.msk.f32.vlgmr.msra.gmra.mrb[0].mxu1 %vm33_vm1, %v380_v24  ;;  %528 = vmatprep.subr.bf16.mxu0 %v588_v8 }
  0x8b   :  { %536 = vmatpush3.bf16.msra.mxu1 %v499_v7  ;;  %495 = vmatprep.mubr.msk.f32.mxu1 %vm591_vm0, %v592_v17 }
  0x8c   :  { %537 = vmatprep.subr.bf16.mxu1 %v588_v8 }
  0x8d   :  { %530 = vmatpush3.bf16.msra.mxu0 %v505_v14 }
  0x8e   :  { %531 = vmatprep.subr.bf16.mxu0 %v588_v8 }
  0x8f   :  { %539 = vmatpush3.bf16.msra.mxu1 %v502_v9 }
  0x90   :  { %540 = vmatprep.subr.bf16.mxu1 %v588_v8 }
  0x91   :  { %533 = vmatpush3.bf16.msra.mxu0 %v508_v18 }
  0x93   :  { %542 = vmatpush3.bf16.msra.mxu1 %v505_v14 }
  0x94   :  { %543 = vmatprep.subr.bf16.mxu1 %v588_v8  ;;  %477 = vmatmul.mubr.msk.f32.vlgmr.msra.gmra.mrb[2].mxu0 %vm33_vm1, %v382_v27 }
  0x97   :  { %545 = vmatpush3.bf16.msra.mxu1 %v508_v18 }
  0x9a   :  { %496 = vmatmul.mubr.msk.f32.vlgmr.msra.gmra.mrb[2].mxu1 %vm33_vm1, %v384_v28 }
 0x157   :  { %v103_v30 = vpop.f32.mrb[0].mxu0 }
 0x158   :  { %v104_v31 = vadd.f32 %v103_v30, %v24_v29  ;;  %v440_v32 = vpop.f32.mrb[1].mxu0 }
 0x15a   :  { %108 = vst.msk [vmem:[#allocation2] sm:$0xff] %vm107_vm6, %v104_v31 }
 0x15d   :  { %v184_v33 = vpop.f32.mrb[0].mxu1 }
 0x15e   :  { %v185_v34 = vadd.f32 %v184_v33, %v24_v29  ;;  %v459_v35 = vpop.f32.mrb[1].mxu1 }
 0x160   :  { %189 = vrot.lane.b32.xlu1 %v185_v34, %s593_s30 }
 0x167   :  { %v269_v36 = vpop.f32.mrb[2].mxu0 }
 0x168   :  { %v270_v37 = vadd.f32 %v269_v36, %v24_v29  ;;  %v478_v38 = vpop.f32.mrb[3].mxu0 }
 0x16a   :  { %274 = vrot.lane.b32.xlu0 %v270_v37, %s594_s4 }
 0x16d   :  { %v354_v39 = vpop.f32.mrb[2].mxu1 }
 0x16e   :  { %v355_v40 = vadd.f32 %v354_v39, %v24_v29  ;;  %v497_v41 = vpop.f32.mrb[3].mxu1 }
 0x170   :  { %359 = vrot.lane.b32.xlu1 %v355_v40, %s595_s5 }
 0x1d2   :  { %v190_v42 = vpop.permute.xlu1 %189 }
 0x1d3   :  { %193 = vst.msk [vmem:[#allocation2] sm:$0xff] %vm192_vm7, %v190_v42 }
 0x1dc   :  { %v275_v43 = vpop.permute.xlu0 %274 }
 0x1dd   :  { %278 = vst.msk [vmem:[#allocation2] sm:$0xff] %vm277_vm8, %v275_v43 }
 0x1e2   :  { %v360_v44 = vpop.permute.xlu1 %359 }
 0x1e3   :  { %363 = vst.msk [vmem:[#allocation2] sm:$0xff] %vm362_vm9, %v360_v44 }
 0x1e4   :  { %573 = shalt.err (!%p570_p4)
}
 0x1e5   :  { %s574_s10 = scalar_lea.hbm %s686_s3, 128 }
 0x1e6   :  { %p575_p5 = scmp.ne.s32.totalorder %s686_s3, %s574_s10  ;;  %p578_p6 = scmp.lt.u32.totalorder %s574_s10, %s686_s3 }
 0x1e8   :  { %p580_p7 = pnand %p578_p6, %p575_p5 }
 0x1ea   :  { %583 = shalt.err (!%p580_p7)
}
 0x1eb   :  { %373 = dma.vmem_to_hbm [thread:$0]  %s371_s6, 128, %s686_s3, [#allocation3]  }
 0x1ec   :  { %584 = dma.done.wait [#allocation3], 128  }
 0x1ed   :  { %585 = vsyncadd [#allocation3], 4294967168 }
 0x1ee   :  { %377 = vsyncpa [#allocation3], 1 }

</bundles_post_ra>
